<compile_context>
chip_gen: v7x
topology: tpu7x:2x2x1
jax: 0.10.0
libtpu: 0.0.40
codegen_flags: <defaults>
</compile_context>

<pallas_src>
import functools

import jax
import jax.numpy as jnp
from jax import lax
from jax.experimental import pallas as pl
from jax.experimental.pallas import tpu as pltpu


def _round_up(x, m):
    return ((x + m - 1) // m) * m


def _head_kernel(emb_ref, w1_ref, b1_ref, w2_ref, b2_ref, wc_ref, bc_ref,
                 out_ref, acc_ref, *, seq_len, seq_tile, mask_seq_tail):
    # Grid = (batch_tiles, seq_tiles); seq is the innermost (reduction) axis.
    s = pl.program_id(1)

    @pl.when(s == 0)
    def _init():
        acc_ref[...] = jnp.zeros_like(acc_ref)

    # Upcast the streamed tile to f32 before accumulating (keeps the add on the
    # f32 VPU path everywhere, incl. v5e which has no bf16 VPU).
    tile = emb_ref[...].astype(jnp.float32)                    # (TB, TS, D)
    if mask_seq_tail:
        # Final sequence tile is partial: rows >= seq_len hold stale VMEM data
        # (no padded copy was made), so zero them before the reduction.
        seq_idx = s * seq_tile + lax.broadcasted_iota(
            jnp.int32, (1, seq_tile, 1), 1)
        tile = jnp.where(seq_idx < seq_len, tile, 0.0)

    # TODO(synk): if a v5e bundle dump shows the XLU sublane reduce (not DMA)
    #             binding, switch this to a ones-vector dot_general over TS.
    acc_ref[...] += jnp.sum(tile, axis=1)                      # (TB, D)

    @pl.when(s == pl.num_programs(1) - 1)
    def _finalize():
        pooled = acc_ref[...] * (1.0 / seq_len)                # mean over real S
        h = jnp.tanh(
            jnp.dot(pooled, w1_ref[...], preferred_element_type=jnp.float32)
            + b1_ref[...])                                     # (TB, Hp)
        enc = jnp.tanh(
            jnp.dot(h, w2_ref[...], preferred_element_type=jnp.float32)
            + b2_ref[...])                                     # (TB, Op)
        # dropout (eval mode) == identity
        logits = (jnp.dot(enc, wc_ref[...], preferred_element_type=jnp.float32)
                  + bc_ref[...])                               # (TB, Lp)
        out_ref[...] = logits.astype(out_ref.dtype)


def bert_cls_head(embeddings, w1, b1, w2, b2, wc, bc):
    """pooled-mean(embeddings) -> tanh(xW1+b1) -> tanh(xW2+b2) -> xWc+bc."""
    B, S, D = embeddings.shape
    H = w1.shape[1]
    O = w2.shape[1]
    L = wc.shape[1]
    itemsize = jnp.dtype(embeddings.dtype).itemsize

    # ---- Lane-dense head dims (weight-only pads; negligible bytes). ----
    f32 = jnp.float32
    Hp = _round_up(H, 128)
    Op = _round_up(O, 128)
    Lp = _round_up(L, 128)
    w1_p = jnp.zeros((D, Hp), f32).at[:, :H].set(w1.astype(f32))
    b1_p = jnp.zeros((1, Hp), f32).at[:, :H].set(b1.astype(f32).reshape(1, H))
    w2_p = jnp.zeros((Hp, Op), f32).at[:H, :O].set(w2.astype(f32))
    b2_p = jnp.zeros((1, Op), f32).at[:, :O].set(b2.astype(f32).reshape(1, O))
    wc_p = jnp.zeros((Op, Lp), f32).at[:O, :L].set(wc.astype(f32))
    bc_p = jnp.zeros((1, Lp), f32).at[:, :L].set(bc.astype(f32).reshape(1, L))

    # ---- Tile selection (no padding of the embedding stream). ----
    if B <= 8:
        TB = B                                  # full batch in one block
    else:
        # >=2 batch blocks so v7x's second TensorCore gets work; cap at 128.
        TB = min(128, _round_up(pl.cdiv(B, 2), 8))

    stream_budget = 20 << 20                    # double-buffered emb stream cap
    ts = stream_budget // (2 * TB * D * itemsize)
    ts = max(8, (ts // 8) * 8)
    TS = min(ts, _round_up(S, 8))               # sequence tile (multiple of 8)

    grid = (pl.cdiv(B, TB), pl.cdiv(S, TS))
    mask_seq_tail = (S % TS) != 0

    def resident2d(shape):
        # Constant index_map -> DMA'd once, stays VMEM-resident.
        return pl.BlockSpec(shape, lambda b, s: (0, 0))

    weight_bytes = (D * Hp + Hp + Hp * Op + Op + Op * Lp + Lp) * 4
    vmem_bytes = (
        2 * TB * TS * D * itemsize              # double-buffered emb tile
        + 2 * weight_bytes                      # weights (default dbl-buffered)
        + TB * D * 4                            # accumulator scratch
        + 2 * TB * Lp * 4                       # output block
    )
    vmem_limit = int(min(max(int(vmem_bytes * 1.25), 16 << 20), 40 << 20))
    vmem_limit = max(vmem_limit, vmem_bytes + (2 << 20))

    cost = pl.CostEstimate(
        flops=B * S * D + 2 * B * (D * Hp + Hp * Op + Op * Lp),
        transcendentals=B * (Hp + Op),
        bytes_accessed=B * S * D * itemsize + weight_bytes + B * Lp * 4,
    )

    out_p = pl.pallas_call(
        functools.partial(_head_kernel, seq_len=S, seq_tile=TS,
                          mask_seq_tail=mask_seq_tail),
        out_shape=jax.ShapeDtypeStruct((B, Lp), jnp.float32),
        grid_spec=pltpu.PrefetchScalarGridSpec(
            num_scalar_prefetch=0,
            grid=grid,
            in_specs=[
                pl.BlockSpec((TB, TS, D), lambda b, s: (b, s, 0)),  # streamed emb
                resident2d((D, Hp)),
                resident2d((1, Hp)),
                resident2d((Hp, Op)),
                resident2d((1, Op)),
                resident2d((Op, Lp)),
                resident2d((1, Lp)),
            ],
            out_specs=pl.BlockSpec((TB, Lp), lambda b, s: (b, 0)),
            scratch_shapes=[pltpu.VMEM((TB, D), jnp.float32)],
        ),
        compiler_params=pltpu.CompilerParams(
            dimension_semantics=("parallel", "arbitrary"),
            vmem_limit_bytes=vmem_limit,
        ),
        cost_estimate=cost,
    )(embeddings, w1_p, b1_p, w2_p, b2_p, wc_p, bc_p)

    return out_p[:, :L]


if __name__ == "__main__":
    # Small, shape-consistent configuration:
    #   batch=2, seq=8, bert_dim=32, hidden_size=32, out_size=32, num_labels=8
    B, S, D, H, O, L = 2, 8, 32, 32, 32, 8

    key = jax.random.PRNGKey(0)
    k_emb, k_w1, k_b1, k_w2, k_b2, k_wc, k_bc = jax.random.split(key, 7)

    # "BERT last_hidden_state" stand-in (frozen BERT output).
    embeddings = jax.random.normal(k_emb, (B, S, D), dtype=jnp.float32)

    # Encoder parameters (deterministic init).
    w1 = jax.random.uniform(k_w1, (D, H), minval=-0.1, maxval=0.1, dtype=jnp.float32)
    b1 = jax.random.uniform(k_b1, (1, H), minval=-0.1, maxval=0.1, dtype=jnp.float32)
    w2 = jax.random.uniform(k_w2, (H, O), minval=-0.1, maxval=0.1, dtype=jnp.float32)
    b2 = jax.random.uniform(k_b2, (1, O), minval=-0.1, maxval=0.1, dtype=jnp.float32)

    # Classifier: nn.init.uniform_(-0.1, 0.1) for weight and bias.
    wc = jax.random.uniform(k_wc, (O, L), minval=-0.1, maxval=0.1, dtype=jnp.float32)
    bc = jax.random.uniform(k_bc, (1, L), minval=-0.1, maxval=0.1, dtype=jnp.float32)

    logits = bert_cls_head(embeddings, w1, b1, w2, b2, wc, bc)
    jax.block_until_ready(logits)

    # Pure-JAX reference check.
    pooled = jnp.mean(embeddings, axis=1)
    ref = jnp.tanh(pooled @ w1 + b1)
    ref = jnp.tanh(ref @ w2 + b2)
    ref = ref @ wc + bc
    assert logits.shape == (B, L)
    assert jnp.allclose(logits, ref, atol=1e-5, rtol=1e-5), "mismatch vs reference"

    print("KERNEL_OK")
</pallas_src>

<mosaic_0001>
module attributes {stable_mosaic.version = 11 : i64} {
  func.func @_head_kernel(%arg0: i32, %arg1: i32, %arg2: memref<2x8x32xf32, #tpu.memory_space<vmem>>, %arg3: memref<32x128xf32, #tpu.memory_space<vmem>>, %arg4: memref<1x128xf32, #tpu.memory_space<vmem>>, %arg5: memref<128x128xf32, #tpu.memory_space<vmem>>, %arg6: memref<1x128xf32, #tpu.memory_space<vmem>>, %arg7: memref<128x128xf32, #tpu.memory_space<vmem>>, %arg8: memref<1x128xf32, #tpu.memory_space<vmem>>, %arg9: memref<2x128xf32, #tpu.memory_space<vmem>>, %arg10: memref<2x32xf32, #tpu.memory_space<vmem>>) attributes {dimension_semantics = [#tpu.dimension_semantics<parallel>, #tpu.dimension_semantics<arbitrary>], iteration_bounds = array<i64: 1, 1>, scalar_prefetch = 0 : i64, scratch_operands = 1 : i64, tpu.core_type = #tpu.core_type<tc>, window_params = [{transform_indices = @transform_0, window_bounds = array<i64: 2, 8, 32>}, {pipeline_mode = #tpu.pipeline_mode<synchronous>, transform_indices = @transform_1, window_bounds = array<i64: 32, 128>}, {pipeline_mode = #tpu.pipeline_mode<synchronous>, transform_indices = @transform_2, window_bounds = array<i64: 1, 128>}, {pipeline_mode = #tpu.pipeline_mode<synchronous>, transform_indices = @transform_3, window_bounds = array<i64: 128, 128>}, {pipeline_mode = #tpu.pipeline_mode<synchronous>, transform_indices = @transform_4, window_bounds = array<i64: 1, 128>}, {pipeline_mode = #tpu.pipeline_mode<synchronous>, transform_indices = @transform_5, window_bounds = array<i64: 128, 128>}, {pipeline_mode = #tpu.pipeline_mode<synchronous>, transform_indices = @transform_6, window_bounds = array<i64: 1, 128>}, {transform_indices = @transform_7, window_bounds = array<i64: 2, 128>}]} {
    %c0_i32 = arith.constant 0 : i32
    %0 = arith.cmpi eq, %arg1, %c0_i32 : i32
    %1 = arith.extui %0 : i1 to i32
    %c0_i32_0 = arith.constant 0 : i32
    %2 = arith.cmpi ne, %1, %c0_i32_0 : i32
    scf.if %2 {
      %cst_9 = arith.constant 0.000000e+00 : f32
      %11 = vector.broadcast %cst_9 : f32 to vector<2x32xf32>
      %c0_10 = arith.constant 0 : index
      %c0_11 = arith.constant 0 : index
      %12 = vector.load %arg10[%c0_10, %c0_11] : memref<2x32xf32, #tpu.memory_space<vmem>>, vector<2x32xf32>
      tpu.vector_store %arg10[%c0_10, %c0_11], %11 {strides = array<i32>} : memref<2x32xf32, #tpu.memory_space<vmem>>, vector<2x32xf32>,
    } else {
    }
    %c0 = arith.constant 0 : index
    %c0_1 = arith.constant 0 : index
    %c0_2 = arith.constant 0 : index
    %3 = vector.load %arg2[%c0, %c0_1, %c0_2] : memref<2x8x32xf32, #tpu.memory_space<vmem>>, vector<2x8x32xf32>
    %c0_3 = arith.constant 0 : index
    %c0_4 = arith.constant 0 : index
    %4 = vector.load %arg10[%c0_3, %c0_4] : memref<2x32xf32, #tpu.memory_space<vmem>>, vector<2x32xf32>
    %cst = arith.constant dense<0.000000e+00> : vector<2x32xf32>
    %5 = vector.multi_reduction <add>, %3, %cst [1] : vector<2x8x32xf32> to vector<2x32xf32>
    %6 = arith.addf %4, %5 : vector<2x32xf32>
    %c0_5 = arith.constant 0 : index
    %c0_6 = arith.constant 0 : index
    %7 = vector.load %arg10[%c0_5, %c0_6] : memref<2x32xf32, #tpu.memory_space<vmem>>, vector<2x32xf32>
    tpu.vector_store %arg10[%c0_5, %c0_6], %6 {strides = array<i32>} : memref<2x32xf32, #tpu.memory_space<vmem>>, vector<2x32xf32>,
    %c0_i32_7 = arith.constant 0 : i32
    %8 = arith.cmpi eq, %arg1, %c0_i32_7 : i32
    %9 = arith.extui %8 : i1 to i32
    %c0_i32_8 = arith.constant 0 : i32
    %10 = arith.cmpi ne, %9, %c0_i32_8 : i32
    scf.if %10 {
      %c0_9 = arith.constant 0 : index
      %c0_10 = arith.constant 0 : index
      %11 = vector.load %arg10[%c0_9, %c0_10] : memref<2x32xf32, #tpu.memory_space<vmem>>, vector<2x32xf32>
      %cst_11 = arith.constant 1.250000e-01 : f32
      %12 = vector.broadcast %cst_11 : f32 to vector<2x32xf32>
      %13 = arith.mulf %11, %12 : vector<2x32xf32>
      %c0_12 = arith.constant 0 : index
      %c0_13 = arith.constant 0 : index
      %14 = vector.load %arg3[%c0_12, %c0_13] : memref<32x128xf32, #tpu.memory_space<vmem>>, vector<32x128xf32>
      %cst_14 = arith.constant dense<0.000000e+00> : vector<2x128xf32>
      %15 = tpu.matmul %13, %14, %cst_14 {dimension_numbers = #tpu.dot_dimension_numbers<[1], [0], [0], [1], [0, 0, 1, 1], [], []>} : vector<2x32xf32>, vector<32x128xf32>, vector<2x128xf32> -> vector<2x128xf32>
      %c0_15 = arith.constant 0 : index
      %c0_16 = arith.constant 0 : index
      %16 = vector.load %arg4[%c0_15, %c0_16] : memref<1x128xf32, #tpu.memory_space<vmem>>, vector<1x128xf32>
      %17 = vector.broadcast %16 : vector<1x128xf32> to vector<2x128xf32>
      %18 = arith.addf %15, %17 : vector<2x128xf32>
      %19 = math.tanh %18 : vector<2x128xf32>
      %c0_17 = arith.constant 0 : index
      %c0_18 = arith.constant 0 : index
      %20 = vector.load %arg5[%c0_17, %c0_18] : memref<128x128xf32, #tpu.memory_space<vmem>>, vector<128x128xf32>
      %cst_19 = arith.constant dense<0.000000e+00> : vector<2x128xf32>
      %21 = tpu.matmul %19, %20, %cst_19 {dimension_numbers = #tpu.dot_dimension_numbers<[1], [0], [0], [1], [0, 0, 1, 1], [], []>} : vector<2x128xf32>, vector<128x128xf32>, vector<2x128xf32> -> vector<2x128xf32>
      %c0_20 = arith.constant 0 : index
      %c0_21 = arith.constant 0 : index
      %22 = vector.load %arg6[%c0_20, %c0_21] : memref<1x128xf32, #tpu.memory_space<vmem>>, vector<1x128xf32>
      %23 = vector.broadcast %22 : vector<1x128xf32> to vector<2x128xf32>
      %24 = arith.addf %21, %23 : vector<2x128xf32>
      %25 = math.tanh %24 : vector<2x128xf32>
      %c0_22 = arith.constant 0 : index
      %c0_23 = arith.constant 0 : index
      %26 = vector.load %arg7[%c0_22, %c0_23] : memref<128x128xf32, #tpu.memory_space<vmem>>, vector<128x128xf32>
      %cst_24 = arith.constant dense<0.000000e+00> : vector<2x128xf32>
      %27 = tpu.matmul %25, %26, %cst_24 {dimension_numbers = #tpu.dot_dimension_numbers<[1], [0], [0], [1], [0, 0, 1, 1], [], []>} : vector<2x128xf32>, vector<128x128xf32>, vector<2x128xf32> -> vector<2x128xf32>
      %c0_25 = arith.constant 0 : index
      %c0_26 = arith.constant 0 : index
      %28 = vector.load %arg8[%c0_25, %c0_26] : memref<1x128xf32, #tpu.memory_space<vmem>>, vector<1x128xf32>
      %29 = vector.broadcast %28 : vector<1x128xf32> to vector<2x128xf32>
      %30 = arith.addf %27, %29 : vector<2x128xf32>
      %c0_27 = arith.constant 0 : index
      %c0_28 = arith.constant 0 : index
      %31 = vector.load %arg9[%c0_27, %c0_28] : memref<2x128xf32, #tpu.memory_space<vmem>>, vector<2x128xf32>
      tpu.vector_store %arg9[%c0_27, %c0_28], %30 {strides = array<i32>} : memref<2x128xf32, #tpu.memory_space<vmem>>, vector<2x128xf32>,
    } else {
    }
    return
  }
  func.func @transform_0(%arg0: i32, %arg1: i32) -> (i32, i32, i32) {
    %c0_i32 = arith.constant 0 : i32
    %c0_i32_0 = arith.constant 0 : i32
    return %arg0, %arg1, %c0_i32 : i32, i32, i32
  }
  func.func @transform_1(%arg0: i32, %arg1: i32) -> (i32, i32) {
    %c0_i32 = arith.constant 0 : i32
    %c0_i32_0 = arith.constant 0 : i32
    %c0_i32_1 = arith.constant 0 : i32
    return %c0_i32, %c0_i32_0 : i32, i32
  }
  func.func @transform_2(%arg0: i32, %arg1: i32) -> (i32, i32) {
    %c0_i32 = arith.constant 0 : i32
    %c0_i32_0 = arith.constant 0 : i32
    %c0_i32_1 = arith.constant 0 : i32
    return %c0_i32, %c0_i32_0 : i32, i32
  }
  func.func @transform_3(%arg0: i32, %arg1: i32) -> (i32, i32) {
    %c0_i32 = arith.constant 0 : i32
    %c0_i32_0 = arith.constant 0 : i32
    %c0_i32_1 = arith.constant 0 : i32
    return %c0_i32, %c0_i32_0 : i32, i32
  }
  func.func @transform_4(%arg0: i32, %arg1: i32) -> (i32, i32) {
    %c0_i32 = arith.constant 0 : i32
    %c0_i32_0 = arith.constant 0 : i32
    %c0_i32_1 = arith.constant 0 : i32
    return %c0_i32, %c0_i32_0 : i32, i32
  }
  func.func @transform_5(%arg0: i32, %arg1: i32) -> (i32, i32) {
    %c0_i32 = arith.constant 0 : i32
    %c0_i32_0 = arith.constant 0 : i32
    %c0_i32_1 = arith.constant 0 : i32
    return %c0_i32, %c0_i32_0 : i32, i32
  }
  func.func @transform_6(%arg0: i32, %arg1: i32) -> (i32, i32) {
    %c0_i32 = arith.constant 0 : i32
    %c0_i32_0 = arith.constant 0 : i32
    %c0_i32_1 = arith.constant 0 : i32
    return %c0_i32, %c0_i32_0 : i32, i32
  }
  func.func @transform_7(%arg0: i32, %arg1: i32) -> (i32, i32) {
    %c0_i32 = arith.constant 0 : i32
    %c0_i32_0 = arith.constant 0 : i32
    return %arg0, %c0_i32 : i32, i32
  }
}

</mosaic_0001>

<bundles_post_ra>
// kernel: tpu_custom_call.1
= control target key start
LH: loop header
LB: loop body
LE: loop exit
PB: predicated region body
PF: predicated region fallthrough
CT: control target
= control target key end

     0   :  { %12 = vsyncpa [#allocation4], 0  ;;  %s894_s0 = inlined_call_operand.hbm [shape: f32[2,8,32], index: 0, kind: input, shape index: {}]   ;;  %s895_s1 = inlined_call_operand.hbm [shape: f32[32,128], index: 1, kind: input, shape index: {}]   ;;  %s896_s2 = inlined_call_operand.vmem [shape: f32[1,128], index: 2, kind: input, shape index: {}]   ;;  %s897_s3 = inlined_call_operand.hbm [shape: f32[128,128], index: 3, kind: input, shape index: {}]   ;;  %s898_s4 = inlined_call_operand.vmem [shape: f32[1,128], index: 4, kind: input, shape index: {}]   ;;  %s899_s5 = inlined_call_operand.hbm [shape: f32[128,128], index: 5, kind: input, shape index: {}]   ;;  %s900_s6 = inlined_call_operand.vmem [shape: f32[1,128], index: 6, kind: input, shape index: {}]   ;;  %s901_s7 = inlined_call_operand.hbm [shape: f32[2,128], index: 7, kind: output, shape index: {}]  }
   0x1   :  { %13 = vsyncpa [#allocation7], 0 }
   0x2   :  { %14 = vsyncpa [#allocation10], 0 }
   0x3   :  { %15 = vsyncpa [#allocation5], 0  ;;  %s719_s24 = smov [#allocation6]   ;;  %s720_s26 = smov [#allocation3]  }
   0x4   :  { %s33_s25 = sshll.u32 %s719_s24, 4  ;;  %s21_s27 = sshll.u32 %s720_s26, 4  ;;  %s34_s25 = int_to_ptr.vmem [resolvable:$true] %s33_s25  ;;  %s769_s27 = int_to_ptr.vmem [resolvable:$true] %s21_s27 }
   0x5   :  { %s601_s30 = scalar_lea.hbm %s895_s1, 512 }
   0x6   :  { %p602_p0 = scmp.ne.s32.totalorder %s895_s1, %s601_s30  ;;  %p605_p1 = scmp.lt.u32.totalorder %s601_s30, %s895_s1 }
   0x8   :  { %p607_p2 = pnand %p605_p1, %p602_p0 }
   0xa   :  { %610 = shalt.err (!%p607_p2)
}
   0xb   :  { %s611_s12 = scalar_lea.vmem %s34_s25, 512  ;;  %p616_p4 = scmp.lt.s32.totalorder %s34_s25, %s34_s25 }
   0xc   :  { %p612_p3 = scmp.ne.s32.totalorder %s34_s25, %s611_s12  ;;  %p617_p5 = scmp.lt.s32.totalorder %s611_s12, %s611_s12 }
   0xe   :  { %p618_p6 = por %p617_p5, %p616_p4 }
  0x10   :  { %p619_p7 = pnand %p618_p6, %p612_p3 }
  0x12   :  { %622 = shalt.err (!%p619_p7)
}
  0x13   :  { %s721_s13 = smov 128   ;;  %s722_s14 = smov 8  }
  0x14   :  { %39 = dma.hbm_to_vmem [thread:$0]  %s895_s1, 512, %s34_s25, [#allocation7], %s721_s13, %s721_s13, %s722_s14  }
  0x15   :  { %s623_s19 = scalar_lea.hbm %s894_s0, 256 }
  0x16   :  { %p624_p8 = scmp.ne.s32.totalorder %s894_s0, %s623_s19  ;;  %p627_p9 = scmp.lt.u32.totalorder %s623_s19, %s894_s0 }
  0x18   :  { %p629_p10 = pnand %p627_p9, %p624_p8 }
  0x1a   :  { %632 = shalt.err (!%p629_p10)
}
  0x1b   :  { %s633_s24 = scalar_lea.vmem %s769_s27, 256  ;;  %p638_p12 = scmp.lt.s32.totalorder %s769_s27, %s769_s27 }
  0x1c   :  { %p634_p11 = scmp.ne.s32.totalorder %s769_s27, %s633_s24  ;;  %p639_p13 = scmp.lt.s32.totalorder %s633_s24, %s633_s24 }
  0x1e   :  { %p640_p0 = por %p639_p13, %p638_p12 }
  0x20   :  { %p641_p1 = pnand %p640_p0, %p634_p11 }
  0x22   :  { %644 = shalt.err (!%p641_p1)
}
  0x23   :  { %27 = dma.hbm_to_vmem [thread:$0]  %s894_s0, 256, %s769_s27, [#allocation4], %s721_s13, %s721_s13, %s722_s14  }
  0x24   :  { %s723_s26 = smov [#allocation8]   ;;  %s724_s29 = smov [#allocation9]  }
  0x25   :  { %s47_s28 = sshll.u32 %s723_s26, 4  ;;  %s61_s30 = sshll.u32 %s724_s29, 4  ;;  %s48_s28 = int_to_ptr.vmem [resolvable:$true] %s47_s28  ;;  %s806_s30 = int_to_ptr.vmem [resolvable:$true] %s61_s30 }
  0x26   :  { %s645_s10 = scalar_lea.hbm %s897_s3, 2048 }
  0x27   :  { %p646_p2 = scmp.ne.s32.totalorder %s897_s3, %s645_s10  ;;  %p649_p3 = scmp.lt.u32.totalorder %s645_s10, %s897_s3 }
  0x29   :  { %p651_p4 = pnand %p649_p3, %p646_p2 }
  0x2b   :  { %654 = shalt.err (!%p651_p4)
}
  0x2c   :  { %s655_s0 = scalar_lea.vmem %s48_s28, 2048  ;;  %p660_p6 = scmp.lt.s32.totalorder %s48_s28, %s48_s28 }
  0x2d   :  { %p656_p5 = scmp.ne.s32.totalorder %s48_s28, %s655_s0  ;;  %p661_p7 = scmp.lt.s32.totalorder %s655_s0, %s655_s0 }
  0x2f   :  { %p662_p8 = por %p661_p7, %p660_p6 }
  0x31   :  { %p663_p9 = pnand %p662_p8, %p656_p5 }
  0x33   :  { %666 = shalt.err (!%p663_p9)
}
  0x34   :  { %53 = dma.hbm_to_vmem [thread:$0]  %s897_s3, 2048, %s48_s28, [#allocation7], %s721_s13, %s721_s13, %s722_s14  }
  0x35   :  { %s667_s20 = scalar_lea.hbm %s899_s5, 2048 }
  0x36   :  { %p668_p10 = scmp.ne.s32.totalorder %s899_s5, %s667_s20  ;;  %p671_p11 = scmp.lt.u32.totalorder %s667_s20, %s899_s5 }
  0x38   :  { %p673_p12 = pnand %p671_p11, %p668_p10 }
  0x3a   :  { %676 = shalt.err (!%p673_p12)
}
  0x3b   :  { %s677_s1 = scalar_lea.vmem %s806_s30, 2048  ;;  %p682_p0 = scmp.lt.s32.totalorder %s806_s30, %s806_s30 }
  0x3c   :  { %p678_p13 = scmp.ne.s32.totalorder %s806_s30, %s677_s1  ;;  %p683_p1 = scmp.lt.s32.totalorder %s677_s1, %s677_s1 }
  0x3e   :  { %p684_p2 = por %p683_p1, %p682_p0 }
  0x40   :  { %p685_p3 = pnand %p684_p2, %p678_p13 }
  0x42   :  { %688 = shalt.err (!%p685_p3)
}
  0x43   :  { %67 = dma.hbm_to_vmem [thread:$0]  %s899_s5, 2048, %s806_s30, [#allocation10], %s721_s13, %s721_s13, %s722_s14  }
  0x44   :  { %711 = dma.done.wait [#allocation4], 256  }
  0x45   :  { %712 = vsyncadd [#allocation4], 4294967040 }
  0x46   :  { %713 = dma.done.wait [#allocation7], 2560  }
  0x47   :  { %714 = vsyncadd [#allocation7], 4294964736 }
  0x48   :  { %715 = dma.done.wait [#allocation10], 2048  }
  0x49   :  { %716 = vsyncadd [#allocation10], 4294965248  ;;  %vm86_vm0 = vcmask 254976   ;;  %v725_v0 = vmov 0.0|0.0   ;;  %v726_v1 = vmov 0.0   ;;  %vm727_vm1 = vmmov 0  }
  0x4a   :  { %533 = vmatprep.subr.bf16.mxu0 %v725_v0  ;;  %87 = vst.msk [vmem:[#allocation2] sm:$0x3] %vm86_vm0, %v726_v1  ;;  %460 = vmatprep.mubr.msk.f32.mxu0 %vm727_vm1, %v726_v1  ;;  %vm91_vm2 = vcmask 261120   ;;  %v119_v2 = vld [vmem:[#allocation6] sm:$0xff]  ;;  %v120_v3 = vld [vmem:[#allocation6 + $0x8] sm:$0xff]  ;;  %v121_v4 = vld [vmem:[#allocation6 + $0x10] sm:$0xff] }
  0x4b   :  { %539 = vmatprep.subr.bf16.mxu1 %v725_v0  ;;  %495 = vmatprep.mubr.msk.f32.mxu1 %vm727_vm1, %v726_v1  ;;  %v534_v5 = vpack.c.bf16 %v120_v3, %v119_v2  ;;  %v122_v6 = vld [vmem:[#allocation6 + $0x18] sm:$0xff]  ;;  %v88_v7 = vld [vmem:[#allocation3] sm:$0xff]  ;;  %v204_v11 = vld [vmem:[#allocation8] sm:$0xff]  ;;  %vm108_vm3 = vcmask 1041409   ;;  %s728_s29 = smov [#allocation11]  }
  0x4c   :  { %v89_v8 = vld [vmem:[#allocation3 + $0x8] sm:$0xff]  ;;  %v92_v9 = vsel %vm91_vm2, %v88_v7, 0.0  ;;  %v205_v12 = vld [vmem:[#allocation8 + $0x8] sm:$0xff]  ;;  %v537_v13 = vpack.c.bf16 %v122_v6, %v121_v4  ;;  %v206_v17 = vld [vmem:[#allocation8 + $0x10] sm:$0xff]  ;;  %s398_s30 = sshll.u32 %s728_s29, 4  ;;  %s399_s30 = int_to_ptr.vmem [resolvable:$true] %s398_s30 }
  0x4d   :  { %v99_v10 = vsel %vm91_vm2, %v89_v8, 0.0  ;;  %535 = vmatpush3.bf16.msra.mxu0 %v534_v5  ;;  %v93_v14 = vrot.slane %v92_v9, 4  ;;  %v540_v16 = vpack.c.bf16 %v205_v12, %v204_v11  ;;  %v207_v18 = vld [vmem:[#allocation8 + $0x18] sm:$0xff]  ;;  %v208_v22 = vld [vmem:[#allocation8 + $0x20] sm:$0xff]  ;;  %v209_v23 = vld [vmem:[#allocation8 + $0x28] sm:$0xff]  ;;  %s689_s8 = scalar_lea.vmem %s399_s30, 32  ;;  %p694_p5 = scmp.lt.s32.totalorder %s399_s30, %s399_s30 }
  0x4e   :  { %v100_v15 = vrot.slane %v99_v10, 4  ;;  %536 = vmatprep.subr.bf16.mxu0 %v725_v0  ;;  %v543_v21 = vpack.c.bf16 %v207_v18, %v206_v17  ;;  %v546_v28 = vpack.c.bf16 %v209_v23, %v208_v22  ;;  %v210_v29 = vld [vmem:[#allocation8 + $0x30] sm:$0xff]  ;;  %v211_v30 = vld [vmem:[#allocation8 + $0x38] sm:$0xff]  ;;  %v212_v37 = vld [vmem:[#allocation8 + $0x40] sm:$0xff]  ;;  %p690_p4 = scmp.ne.s32.totalorder %s399_s30, %s689_s8  ;;  %p695_p6 = scmp.lt.s32.totalorder %s689_s8, %s689_s8 }
  0x4f   :  { %v94_v19 = vadd.f32 %v93_v14, %v92_v9  ;;  %541 = vmatpush3.bf16.msra.mxu1 %v540_v16  ;;  %v549_v36 = vpack.c.bf16 %v211_v30, %v210_v29  ;;  %v213_v38 = vld [vmem:[#allocation8 + $0x48] sm:$0xff]  ;;  %v214_v44 = vld [vmem:[#allocation8 + $0x50] sm:$0xff]  ;;  %v215_v45 = vld [vmem:[#allocation8 + $0x58] sm:$0xff] }
  0x50   :  { %v101_v20 = vadd.f32 %v100_v15, %v99_v10  ;;  %542 = vmatprep.subr.bf16.mxu1 %v725_v0  ;;  %v552_v41 = vpack.c.bf16 %v213_v38, %v212_v37  ;;  %v555_v46 = vpack.c.bf16 %v215_v45, %v214_v44  ;;  %v216_v47 = vld [vmem:[#allocation8 + $0x60] sm:$0xff]  ;;  %v217_v48 = vld [vmem:[#allocation8 + $0x68] sm:$0xff]  ;;  %v218_v50 = vld [vmem:[#allocation8 + $0x70] sm:$0xff]  ;;  %p696_p7 = por %p695_p6, %p694_p5 }
  0x51   :  { %538 = vmatpush3.bf16.msra.mxu0 %v537_v13  ;;  %v95_v24 = vrot.slane %v94_v19, 2  ;;  %v90_v33 = vld [vmem:[#allocation2] sm:$0x3]  ;;  %v558_v49 = vpack.c.bf16 %v217_v48, %v216_v47  ;;  %v219_v51 = vld [vmem:[#allocation8 + $0x78] sm:$0xff]  ;;  %v298_v53 = vld [vmem:[#allocation9] sm:$0xff] }
  0x52   :  { %v102_v25 = vrot.slane %v101_v20, 2  ;;  %563 = vmatprep.subr.bf16.mxu0 %v725_v0  ;;  %v561_v52 = vpack.c.bf16 %v219_v51, %v218_v50  ;;  %v299_v54 = vld [vmem:[#allocation9 + $0x8] sm:$0xff]  ;;  %v300_v55 = vld [vmem:[#allocation9 + $0x10] sm:$0xff]  ;;  %v301_v57 = vld [vmem:[#allocation9 + $0x18] sm:$0xff]  ;;  %p697_p8 = pnand %p696_p7, %p690_p4 }
  0x53   :  { %v96_v26 = vadd.f32 %v95_v24, %v94_v19  ;;  %544 = vmatpush3.bf16.msra.mxu1 %v543_v21  ;;  %v564_v56 = vpack.c.bf16 %v299_v54, %v298_v53  ;;  %v567_v58 = vpack.c.bf16 %v301_v57, %v300_v55  ;;  %v302_v59 = vld [vmem:[#allocation9 + $0x20] sm:$0xff]  ;;  %v303_v60 = vld [vmem:[#allocation9 + $0x28] sm:$0xff]  ;;  %v304_v62 = vld [vmem:[#allocation9 + $0x30] sm:$0xff] }
  0x54   :  { %v103_v27 = vadd.f32 %v102_v25, %v101_v20  ;;  %545 = vmatprep.subr.bf16.mxu1 %v725_v0  ;;  %v570_v61 = vpack.c.bf16 %v303_v60, %v302_v59  ;;  %v305_v63 = vld [vmem:[#allocation9 + $0x38] sm:$0xff]  ;;  %v306_v2 = vld [vmem:[#allocation9 + $0x40] sm:$0xff]  ;;  %v307_v3 = vld [vmem:[#allocation9 + $0x48] sm:$0xff] }
  0x55   :  { %v97_v31 = vrot.slane %v96_v26, 1  ;;  %v576_v4 = vpack.c.bf16 %v307_v3, %v306_v2  ;;  %v409_v5 = vld [vmem:[%s896_s2] ss:$0 sm:$0xff]  ;;  %v308_v10 = vld [vmem:[#allocation9 + $0x50] sm:$0xff]  ;;  %v309_v11 = vld [vmem:[#allocation9 + $0x58] sm:$0xff] }
  0x56   :  { %v104_v32 = vrot.slane %v103_v27, 1  ;;  %v579_v12 = vpack.c.bf16 %v309_v11, %v308_v10  ;;  %v310_v13 = vld [vmem:[#allocation9 + $0x60] sm:$0xff]  ;;  %v311_v14 = vld [vmem:[#allocation9 + $0x68] sm:$0xff]  ;;  %v312_v16 = vld [vmem:[#allocation9 + $0x70] sm:$0xff] }
  0x57   :  { %v98_v34 = vadd.f32 %v97_v31, %v96_v26  ;;  %547 = vmatpush3.bf16.msra.mxu1 %v546_v28  ;;  %v582_v15 = vpack.c.bf16 %v311_v14, %v310_v13  ;;  %v313_v17 = vld [vmem:[#allocation9 + $0x78] sm:$0xff]  ;;  %v411_v19 = vld [vmem:[%s898_s4] ss:$0 sm:$0xff] }
  0x58   :  { %v105_v35 = vadd.f32 %v104_v32, %v103_v27  ;;  %548 = vmatprep.subr.bf16.mxu1 %v725_v0  ;;  %v585_v18 = vpack.c.bf16 %v313_v17, %v312_v16  ;;  %v412_v24 = vld [vmem:[%s900_s6] ss:$0 sm:$0xff] }
  0x5a   :  { %v109_v39 = vsel %vm108_vm3, %v105_v35, %v98_v34 }
  0x5b   :  { %v111_v40 = vadd.f32 %v109_v39, %v90_v33  ;;  %550 = vmatpush3.bf16.msra.mxu1 %v549_v36 }
  0x5c   :  { %551 = vmatprep.subr.bf16.mxu1 %v725_v0 }
  0x5d   :  { %113 = vst.msk [vmem:[#allocation2] sm:$0x3] %vm86_vm0, %v111_v40 }
  0x5f   :  { %553 = vmatpush3.bf16.msra.mxu1 %v552_v41 }
  0x60   :  { %554 = vmatprep.subr.bf16.mxu1 %v725_v0 }
  0x63   :  { %556 = vmatpush3.bf16.msra.mxu1 %v555_v46 }
  0x64   :  { %v117_v42 = vld [vmem:[#allocation2] sm:$0x3]  ;;  %557 = vmatprep.subr.bf16.mxu1 %v725_v0 }
  0x65   :  { %v118_v43 = vmul.f32 0.125, %v117_v42 }
  0x67   :  { %461 = vmatmul.mubr.msk.f32.vlgmr.msra.gmra.mrb[0].mxu0 %vm91_vm2, %v118_v43  ;;  %559 = vmatpush3.bf16.msra.mxu1 %v558_v49 }
  0x68   :  { %530 = vmatprep.mubr.msk.f32.mxu0 %vm727_vm1, %v726_v1  ;;  %560 = vmatprep.subr.bf16.mxu1 %v725_v0  ;;  %v573_v1 = vpack.c.bf16 %v305_v63, %v304_v62 }
  0x69   :  { %565 = vmatpush3.bf16.msra.mxu0 %v564_v56 }
  0x6a   :  { %566 = vmatprep.subr.bf16.mxu0 %v725_v0 }
  0x6b   :  { %562 = vmatpush3.bf16.msra.mxu1 %v561_v52 }
  0x6d   :  { %568 = vmatpush3.bf16.msra.mxu0 %v567_v58 }
  0x6e   :  { %569 = vmatprep.subr.bf16.mxu0 %v725_v0 }
  0x71   :  { %571 = vmatpush3.bf16.msra.mxu0 %v570_v61 }
  0x72   :  { %572 = vmatprep.subr.bf16.mxu0 %v725_v0 }
  0x75   :  { %574 = vmatpush3.bf16.msra.mxu0 %v573_v1 }
  0x76   :  { %575 = vmatprep.subr.bf16.mxu0 %v725_v0 }
  0x79   :  { %577 = vmatpush3.bf16.msra.mxu0 %v576_v4 }
  0x7a   :  { %578 = vmatprep.subr.bf16.mxu0 %v725_v0 }
  0x7d   :  { %580 = vmatpush3.bf16.msra.mxu0 %v579_v12 }
  0x7e   :  { %581 = vmatprep.subr.bf16.mxu0 %v725_v0 }
  0x81   :  { %583 = vmatpush3.bf16.msra.mxu0 %v582_v15 }
  0x82   :  { %584 = vmatprep.subr.bf16.mxu0 %v725_v0 }
  0x85   :  { %586 = vmatpush3.bf16.msra.mxu0 %v585_v18 }
 0x13a   :  { %v199_v6 = vpop.f32.mrb[0].mxu0 }
 0x13b   :  { %v200_v7 = vadd.f32 %v409_v5, %v199_v6  ;;  %v462_v8 = vpop.f32.mrb[1].mxu0 }
 0x13d   :  { %597 = vtanh.f32 %v200_v7 }
 0x147   :  { %v598_v9 = vpop.eup %597 }
 0x148   :  { %496 = vmatmul.mubr.f32.vlgmr.msra.gmra.mrb[0].mxu1 %v598_v9 }
 0x21b   :  { %v293_v20 = vpop.f32.mrb[0].mxu1 }
 0x21c   :  { %v294_v21 = vadd.f32 %v411_v19, %v293_v20  ;;  %v497_v22 = vpop.f32.mrb[1].mxu1 }
 0x21e   :  { %599 = vtanh.f32 %v294_v21 }
 0x228   :  { %v600_v23 = vpop.eup %599 }
 0x229   :  { %531 = vmatmul.mubr.f32.vlgmr.msra.gmra.mrb[2].mxu0 %v600_v23 }
 0x2fc   :  { %v387_v25 = vpop.f32.mrb[2].mxu0 }
 0x2fd   :  { %v388_v26 = vadd.f32 %v412_v24, %v387_v25  ;;  %v532_v0 = vpop.f32.mrb[3].mxu0 }
 0x2ff   :  { %391 = vst [vmem:[#allocation11] sm:$0x3] %v388_v26 }
 0x300   :  { %700 = shalt.err (!%p697_p8)
}
 0x301   :  { %s701_s10 = scalar_lea.hbm %s901_s7, 32 }
 0x302   :  { %p702_p9 = scmp.ne.s32.totalorder %s901_s7, %s701_s10  ;;  %p705_p10 = scmp.lt.u32.totalorder %s701_s10, %s901_s7 }
 0x304   :  { %p707_p11 = pnand %p705_p10, %p702_p9 }
 0x306   :  { %710 = shalt.err (!%p707_p11)
}
 0x307   :  { %401 = dma.vmem_to_hbm [thread:$0]  %s399_s30, 32, %s901_s7, [#allocation5]  }
 0x308   :  { %717 = dma.done.wait [#allocation5], 32  }
 0x309   :  { %718 = vsyncadd [#allocation5], 4294967264 }
 0x30a   :  { %405 = vsyncpa [#allocation4], 1 }
 0x30b   :  { %406 = vsyncpa [#allocation7], 1 }
 0x30c   :  { %407 = vsyncpa [#allocation10], 1 }
 0x30d   :  { %408 = vsyncpa [#allocation5], 1 }

</bundles_post_ra>
